<compile_context>
chip_gen: v6e
topology: v6e:2x2x1
jax: 0.10.0
libtpu: 0.0.40
codegen_flags: <defaults>
</compile_context>

<pallas_src>
import functools

import jax
import jax.numpy as jnp
from jax.experimental import pallas as pl
from jax.experimental.pallas import tpu as pltpu

BN_EPS = 1e-5    # nn.BatchNorm1d default eps (bn_layers)
BNP_EPS = 1e-3   # bn_params eps=0.001


def postpool_kernel(e_ref, w_ref, pslab_ref, gp_bep_ref, out_ref, *, c_dim):
    """One grid step = a block of Nt independent instances.

    e_ref   : (Nt, B, Dmax)   lane-padded inputs
    w_ref   : (3, Dmax, Dmax) square zero-padded [w1 | w2 | wp]
    pslab   : (5, Dmax)       [g1, be1, g2, be2, bp] zero-padded
    gp_bep  : (1, 2) SMEM     scalar gamma/beta of bn_params
    out_ref : (Nt, B, 2*c_dim)
    """
    Nt, B, Dmax = e_ref.shape
    P = 2 * c_dim
    R = Nt * B

    pslab = pslab_ref[...]                              # (5, Dmax)
    x = e_ref[...].reshape(R, Dmax)                     # fuse rows -> one MXU pass/layer

    def layer(x, widx, grow, brow):
        # fc (bias dropped: a per-feature constant cancels exactly under the
        # following BatchNorm's per-feature batch-mean subtraction) -> bn -> ReLU.
        h = jnp.dot(x, w_ref[widx], preferred_element_type=jnp.float32)
        h = h.reshape(Nt, B, Dmax)
        mu = jnp.mean(h, axis=1, keepdims=True)          # per-instance stats
        c = h - mu
        var = jnp.mean(c * c, axis=1, keepdims=True)     # biased (training mode)
        gamma = pslab[grow:grow + 1][None, :, :]         # (1, 1, Dmax)
        beta = pslab[brow:brow + 1][None, :, :]
        h = c * jax.lax.rsqrt(var + BN_EPS) * gamma + beta   # padded lanes stay 0
        h = jnp.maximum(h, 0.0)
        return h.reshape(R, Dmax)

    h = layer(x, 0, 0, 1)        # fc1 -> bn1 -> ReLU
    h = layer(h, 1, 2, 3)        # fc2 -> bn2 -> ReLU

    # fc_params: bias bp is NOT redundant (bn_params subtracts a scalar joint
    # mean, not a per-feature mean).
    p = jnp.dot(h, w_ref[2], preferred_element_type=jnp.float32) + pslab[4:5]
    p = p.reshape(Nt, B, Dmax)[:, :, :P]                 # real lanes only (Nt, B, P)

    # bn_params = BatchNorm1d(1) on view(-1, 1, 2*c_dim): one channel, so
    # statistics are joint over batch AND feature dims, per instance.
    denom = 1.0 / float(B * P)
    mu = jnp.sum(jnp.sum(p, axis=2, keepdims=True), axis=1, keepdims=True) * denom
    c = p - mu
    var = jnp.sum(jnp.sum(c * c, axis=2, keepdims=True), axis=1, keepdims=True) * denom
    gamma_p = gp_bep_ref[0, 0]
    beta_p = gp_bep_ref[0, 1]
    out_ref[...] = c * jax.lax.rsqrt(var + BNP_EPS) * gamma_p + beta_p


def pack_params(params, c_dim):
    """Pack the 12 tiny parameter arrays into 3 slabs.  Call ONCE, not per forward."""
    D = params["w1"].shape[0]
    P = 2 * c_dim
    Dmax = max(D, P)

    def square_pad(w):
        r, c = w.shape
        return jnp.pad(w, ((0, Dmax - r), (0, Dmax - c)))

    def row_pad(v):
        return jnp.pad(v, ((0, 0), (0, Dmax - v.shape[1])))

    wstack = jnp.stack([square_pad(params["w1"]),
                        square_pad(params["w2"]),
                        square_pad(params["wp"])])                    # (3, Dmax, Dmax)
    pslab = jnp.concatenate([row_pad(params["g1"]),
                             row_pad(params["be1"]),
                             row_pad(params["g2"]),
                             row_pad(params["be2"]),
                             row_pad(params["bp"])], axis=0)          # (5, Dmax)
    gp_bep = jnp.concatenate([params["gp"].reshape(1, 1),
                              params["bep"].reshape(1, 1)], axis=1)   # (1, 2)
    return dict(wstack=wstack, pslab=pslab, gp_bep=gp_bep)


def _num_grid_steps(n_instances):
    """2 parallel steps on v7x (feed both TensorCores); 1 otherwise."""
    try:
        kind = jax.devices()[0].device_kind.lower()
    except Exception:
        kind = ""
    if "v7" in kind and n_instances >= 2 and n_instances % 2 == 0:
        return 2
    return 1


def postpool_forward(e, packed, c_dim):
    """e: (B, D) single instance, or (N, B, D) batch of independent instances.

    Returns (mean, logvar), each (B, c_dim) or (N, B, c_dim).
    BatchNorm statistics are computed per instance.
    """
    squeeze = (e.ndim == 2)
    if squeeze:
        e = e[None]
    N, B, D = e.shape
    P = 2 * c_dim
    Dmax = packed["wstack"].shape[1]
    assert Dmax >= D
    if D < Dmax:
        e = jnp.pad(e, ((0, 0), (0, 0), (0, Dmax - D)))

    G = _num_grid_steps(N)
    Nt = N // G

    out = pl.pallas_call(
        functools.partial(postpool_kernel, c_dim=c_dim),
        grid=(G,),
        out_shape=jax.ShapeDtypeStruct((N, B, P), jnp.float32),
        in_specs=[
            pl.BlockSpec((Nt, B, Dmax), lambda n: (n, 0, 0)),          # e block
            pl.BlockSpec((3, Dmax, Dmax), lambda n: (0, 0, 0)),        # weights
            pl.BlockSpec((5, Dmax), lambda n: (0, 0)),                 # bn/bias slab
            pl.BlockSpec(memory_space=pltpu.MemorySpace.SMEM),         # gp/bep scalars
        ],
        out_specs=pl.BlockSpec((Nt, B, P), lambda n: (n, 0, 0)),
        compiler_params=pltpu.CompilerParams(
            dimension_semantics=("parallel",)),
    )(e, packed["wstack"], packed["pslab"], packed["gp_bep"])

    # Lane-contiguous slab emitted by the kernel; split here (free in XLA).
    mean, logvar = out[..., :c_dim], out[..., c_dim:]
    if squeeze:
        mean, logvar = mean[0], logvar[0]
    return mean, logvar


# --------------------------- reference / test ------------------------------

def _bn_over_batch(x, gamma, beta, eps):
    mu = jnp.mean(x, axis=0, keepdims=True)
    c = x - mu
    var = jnp.mean(c * c, axis=0, keepdims=True)
    return c * jax.lax.rsqrt(var + eps) * gamma + beta


def init_params(key, hidden_dim, c_dim):
    """Deterministic synthetic init mimicking PyTorch defaults.
    Linear weights stored pre-transposed as (in_features, out_features)."""
    D = hidden_dim + 1
    ks = jax.random.split(key, 6)

    def lin(kw, kb, fan_in, fan_out):
        bound = 1.0 / float(fan_in) ** 0.5
        w = jax.random.uniform(kw, (fan_in, fan_out), jnp.float32, -bound, bound)
        b = jax.random.uniform(kb, (1, fan_out), jnp.float32, -bound, bound)
        return w, b

    w1, b1 = lin(ks[0], ks[1], D, D)
    w2, b2 = lin(ks[2], ks[3], D, D)
    wp, bp = lin(ks[4], ks[5], D, 2 * c_dim)
    ones = jnp.ones((1, D), jnp.float32)
    zeros = jnp.zeros((1, D), jnp.float32)
    return dict(w1=w1, b1=b1, g1=ones, be1=zeros,
                w2=w2, b2=b2, g2=ones, be2=zeros,
                wp=wp, bp=bp,
                gp=jnp.ones((1, 1), jnp.float32),
                bep=jnp.zeros((1, 1), jnp.float32))


def reference_forward(e, params, c_dim):
    """Pure-JAX reference of the module's forward (includes fc1/fc2 biases)."""
    h = e @ params["w1"] + params["b1"]
    h = _bn_over_batch(h, params["g1"], params["be1"], BN_EPS)
    h = jnp.maximum(h, 0.0)
    h = h @ params["w2"] + params["b2"]
    h = _bn_over_batch(h, params["g2"], params["be2"], BN_EPS)
    h = jnp.maximum(h, 0.0)
    p = h @ params["wp"] + params["bp"]
    mu = jnp.mean(p)
    var = jnp.mean((p - mu) ** 2)
    p = (p - mu) * jax.lax.rsqrt(var + BNP_EPS) * params["gp"] + params["bep"]
    return p[:, :c_dim], p[:, c_dim:]


if __name__ == "__main__":
    hidden_dim = 32          # module uses hidden_dim + 1 = 33 features internally
    c_dim = 16
    B = 8                    # per-instance batch
    N = 4                    # independent instances fused into one kernel call
    D = hidden_dim + 1

    key = jax.random.PRNGKey(0)
    k_e, k_p = jax.random.split(key)
    e = jax.random.normal(k_e, (N, B, D), dtype=jnp.float32)
    params = init_params(k_p, hidden_dim, c_dim)

    packed = pack_params(params, c_dim)                 # packed ONCE, reused per call
    fwd = jax.jit(functools.partial(postpool_forward, c_dim=c_dim))

    # Batched (N, B, D) path: all instances in 1 (or 2 on v7x) grid steps.
    mean, logvar = fwd(e, packed)
    jax.block_until_ready((mean, logvar))

    ref_mean, ref_logvar = jax.vmap(
        lambda ei: reference_forward(ei, params, c_dim))(e)
    assert mean.shape == (N, B, c_dim) and logvar.shape == (N, B, c_dim)
    assert jnp.allclose(mean, ref_mean, rtol=1e-4, atol=1e-4)
    assert jnp.allclose(logvar, ref_logvar, rtol=1e-4, atol=1e-4)

    # Single-instance (B, D) path (matches the original module signature).
    m1, lv1 = fwd(e[0], packed)
    jax.block_until_ready((m1, lv1))
    rm1, rlv1 = reference_forward(e[0], params, c_dim)
    assert jnp.allclose(m1, rm1, rtol=1e-4, atol=1e-4)
    assert jnp.allclose(lv1, rlv1, rtol=1e-4, atol=1e-4)

    print("KERNEL_OK")
</pallas_src>

<mosaic_0001>
module attributes {stable_mosaic.version = 11 : i64} {
  func.func @postpool_kernel(%arg0: i32, %arg1: memref<4x8x33xf32, #tpu.memory_space<vmem>>, %arg2: memref<3x33x33xf32, #tpu.memory_space<vmem>>, %arg3: memref<5x33xf32, #tpu.memory_space<vmem>>, %arg4: memref<1x2xf32, #tpu.memory_space<smem>>, %arg5: memref<4x8x32xf32, #tpu.memory_space<vmem>>) attributes {dimension_semantics = [#tpu.dimension_semantics<parallel>], iteration_bounds = array<i64: 1>, scalar_prefetch = 0 : i64, scratch_operands = 0 : i64, tpu.core_type = #tpu.core_type<tc>, window_params = [{transform_indices = @transform_0, window_bounds = array<i64: 4, 8, 33>}, {pipeline_mode = #tpu.pipeline_mode<synchronous>, transform_indices = @transform_1, window_bounds = array<i64: 3, 33, 33>}, {pipeline_mode = #tpu.pipeline_mode<synchronous>, transform_indices = @transform_2, window_bounds = array<i64: 5, 33>}, {transform_indices = @transform_3, window_bounds = array<i64: 1, 2>}, {transform_indices = @transform_4, window_bounds = array<i64: 4, 8, 32>}]} {
    %c0 = arith.constant 0 : index
    %c0_0 = arith.constant 0 : index
    %0 = vector.load %arg3[%c0, %c0_0] : memref<5x33xf32, #tpu.memory_space<vmem>>, vector<5x33xf32>
    %c0_1 = arith.constant 0 : index
    %c0_2 = arith.constant 0 : index
    %c0_3 = arith.constant 0 : index
    %1 = vector.load %arg1[%c0_1, %c0_2, %c0_3] : memref<4x8x33xf32, #tpu.memory_space<vmem>>, vector<4x8x33xf32>
    %2 = vector.shape_cast %1 : vector<4x8x33xf32> to vector<32x33xf32>
    %c0_4 = arith.constant 0 : index
    %c0_5 = arith.constant 0 : index
    %c0_6 = arith.constant 0 : index
    %3 = vector.load %arg2[%c0_4, %c0_5, %c0_6] : memref<3x33x33xf32, #tpu.memory_space<vmem>>, vector<1x33x33xf32>
    %4 = vector.shape_cast %3 : vector<1x33x33xf32> to vector<33x33xf32>
    %cst = arith.constant dense<0.000000e+00> : vector<32x33xf32>
    %5 = tpu.matmul %2, %4, %cst {dimension_numbers = #tpu.dot_dimension_numbers<[1], [0], [0], [1], [0, 0, 1, 1], [], []>} : vector<32x33xf32>, vector<33x33xf32>, vector<32x33xf32> -> vector<32x33xf32>
    %6 = vector.shape_cast %5 : vector<32x33xf32> to vector<4x8x33xf32>
    %cst_7 = arith.constant dense<0.000000e+00> : vector<4x33xf32>
    %7 = vector.multi_reduction <add>, %6, %cst_7 [1] : vector<4x8x33xf32> to vector<4x33xf32>
    %8 = vector.shape_cast %7 : vector<4x33xf32> to vector<4x1x33xf32>
    %cst_8 = arith.constant 8.000000e+00 : f32
    %9 = vector.broadcast %cst_8 : f32 to vector<4x1x33xf32>
    %10 = arith.divf %8, %9 : vector<4x1x33xf32>
    %11 = vector.broadcast %10 : vector<4x1x33xf32> to vector<4x8x33xf32>
    %12 = arith.subf %6, %11 : vector<4x8x33xf32>
    %13 = arith.mulf %12, %12 : vector<4x8x33xf32>
    %cst_9 = arith.constant dense<0.000000e+00> : vector<4x33xf32>
    %14 = vector.multi_reduction <add>, %13, %cst_9 [1] : vector<4x8x33xf32> to vector<4x33xf32>
    %15 = vector.shape_cast %14 : vector<4x33xf32> to vector<4x1x33xf32>
    %cst_10 = arith.constant 8.000000e+00 : f32
    %16 = vector.broadcast %cst_10 : f32 to vector<4x1x33xf32>
    %17 = arith.divf %15, %16 : vector<4x1x33xf32>
    %18 = vector.extract_strided_slice %0 {offsets = [0, 0], sizes = [1, 33], strides = [1, 1]} : vector<5x33xf32> to vector<1x33xf32>
    %19 = vector.shape_cast %18 : vector<1x33xf32> to vector<1x1x33xf32>
    %20 = vector.extract_strided_slice %0 {offsets = [1, 0], sizes = [1, 33], strides = [1, 1]} : vector<5x33xf32> to vector<1x33xf32>
    %21 = vector.shape_cast %20 : vector<1x33xf32> to vector<1x1x33xf32>
    %cst_11 = arith.constant 9.99999974E-6 : f32
    %22 = vector.broadcast %cst_11 : f32 to vector<4x1x33xf32>
    %23 = arith.addf %17, %22 : vector<4x1x33xf32>
    %24 = math.rsqrt %23 : vector<4x1x33xf32>
    %25 = vector.broadcast %24 : vector<4x1x33xf32> to vector<4x8x33xf32>
    %26 = arith.mulf %12, %25 : vector<4x8x33xf32>
    %27 = vector.broadcast %19 : vector<1x1x33xf32> to vector<4x8x33xf32>
    %28 = arith.mulf %26, %27 : vector<4x8x33xf32>
    %29 = vector.broadcast %21 : vector<1x1x33xf32> to vector<4x8x33xf32>
    %30 = arith.addf %28, %29 : vector<4x8x33xf32>
    %cst_12 = arith.constant 0.000000e+00 : f32
    %31 = vector.broadcast %cst_12 : f32 to vector<4x8x33xf32>
    %32 = arith.maximumf %30, %31 : vector<4x8x33xf32>
    %33 = vector.shape_cast %32 : vector<4x8x33xf32> to vector<32x33xf32>
    %c1 = arith.constant 1 : index
    %c0_13 = arith.constant 0 : index
    %c0_14 = arith.constant 0 : index
    %34 = vector.load %arg2[%c1, %c0_13, %c0_14] : memref<3x33x33xf32, #tpu.memory_space<vmem>>, vector<1x33x33xf32>
    %35 = vector.shape_cast %34 : vector<1x33x33xf32> to vector<33x33xf32>
    %cst_15 = arith.constant dense<0.000000e+00> : vector<32x33xf32>
    %36 = tpu.matmul %33, %35, %cst_15 {dimension_numbers = #tpu.dot_dimension_numbers<[1], [0], [0], [1], [0, 0, 1, 1], [], []>} : vector<32x33xf32>, vector<33x33xf32>, vector<32x33xf32> -> vector<32x33xf32>
    %37 = vector.shape_cast %36 : vector<32x33xf32> to vector<4x8x33xf32>
    %cst_16 = arith.constant dense<0.000000e+00> : vector<4x33xf32>
    %38 = vector.multi_reduction <add>, %37, %cst_16 [1] : vector<4x8x33xf32> to vector<4x33xf32>
    %39 = vector.shape_cast %38 : vector<4x33xf32> to vector<4x1x33xf32>
    %cst_17 = arith.constant 8.000000e+00 : f32
    %40 = vector.broadcast %cst_17 : f32 to vector<4x1x33xf32>
    %41 = arith.divf %39, %40 : vector<4x1x33xf32>
    %42 = vector.broadcast %41 : vector<4x1x33xf32> to vector<4x8x33xf32>
    %43 = arith.subf %37, %42 : vector<4x8x33xf32>
    %44 = arith.mulf %43, %43 : vector<4x8x33xf32>
    %cst_18 = arith.constant dense<0.000000e+00> : vector<4x33xf32>
    %45 = vector.multi_reduction <add>, %44, %cst_18 [1] : vector<4x8x33xf32> to vector<4x33xf32>
    %46 = vector.shape_cast %45 : vector<4x33xf32> to vector<4x1x33xf32>
    %cst_19 = arith.constant 8.000000e+00 : f32
    %47 = vector.broadcast %cst_19 : f32 to vector<4x1x33xf32>
    %48 = arith.divf %46, %47 : vector<4x1x33xf32>
    %49 = vector.extract_strided_slice %0 {offsets = [2, 0], sizes = [1, 33], strides = [1, 1]} : vector<5x33xf32> to vector<1x33xf32>
    %50 = vector.shape_cast %49 : vector<1x33xf32> to vector<1x1x33xf32>
    %51 = vector.extract_strided_slice %0 {offsets = [3, 0], sizes = [1, 33], strides = [1, 1]} : vector<5x33xf32> to vector<1x33xf32>
    %52 = vector.shape_cast %51 : vector<1x33xf32> to vector<1x1x33xf32>
    %cst_20 = arith.constant 9.99999974E-6 : f32
    %53 = vector.broadcast %cst_20 : f32 to vector<4x1x33xf32>
    %54 = arith.addf %48, %53 : vector<4x1x33xf32>
    %55 = math.rsqrt %54 : vector<4x1x33xf32>
    %56 = vector.broadcast %55 : vector<4x1x33xf32> to vector<4x8x33xf32>
    %57 = arith.mulf %43, %56 : vector<4x8x33xf32>
    %58 = vector.broadcast %50 : vector<1x1x33xf32> to vector<4x8x33xf32>
    %59 = arith.mulf %57, %58 : vector<4x8x33xf32>
    %60 = vector.broadcast %52 : vector<1x1x33xf32> to vector<4x8x33xf32>
    %61 = arith.addf %59, %60 : vector<4x8x33xf32>
    %cst_21 = arith.constant 0.000000e+00 : f32
    %62 = vector.broadcast %cst_21 : f32 to vector<4x8x33xf32>
    %63 = arith.maximumf %61, %62 : vector<4x8x33xf32>
    %64 = vector.shape_cast %63 : vector<4x8x33xf32> to vector<32x33xf32>
    %c2 = arith.constant 2 : index
    %c0_22 = arith.constant 0 : index
    %c0_23 = arith.constant 0 : index
    %65 = vector.load %arg2[%c2, %c0_22, %c0_23] : memref<3x33x33xf32, #tpu.memory_space<vmem>>, vector<1x33x33xf32>
    %66 = vector.shape_cast %65 : vector<1x33x33xf32> to vector<33x33xf32>
    %cst_24 = arith.constant dense<0.000000e+00> : vector<32x33xf32>
    %67 = tpu.matmul %64, %66, %cst_24 {dimension_numbers = #tpu.dot_dimension_numbers<[1], [0], [0], [1], [0, 0, 1, 1], [], []>} : vector<32x33xf32>, vector<33x33xf32>, vector<32x33xf32> -> vector<32x33xf32>
    %68 = vector.extract_strided_slice %0 {offsets = [4, 0], sizes = [1, 33], strides = [1, 1]} : vector<5x33xf32> to vector<1x33xf32>
    %69 = vector.broadcast %68 : vector<1x33xf32> to vector<32x33xf32>
    %70 = arith.addf %67, %69 : vector<32x33xf32>
    %71 = vector.shape_cast %70 : vector<32x33xf32> to vector<4x8x33xf32>
    %72 = vector.extract_strided_slice %71 {offsets = [0, 0, 0], sizes = [4, 8, 32], strides = [1, 1, 1]} : vector<4x8x33xf32> to vector<4x8x32xf32>
    %cst_25 = arith.constant dense<0.000000e+00> : vector<4x8xf32>
    %73 = vector.multi_reduction <add>, %72, %cst_25 [2] : vector<4x8x32xf32> to vector<4x8xf32>
    %74 = vector.shape_cast %73 : vector<4x8xf32> to vector<4x8x1xf32>
    %cst_26 = arith.constant dense<0.000000e+00> : vector<4x1xf32>
    %75 = vector.multi_reduction <add>, %74, %cst_26 [1] : vector<4x8x1xf32> to vector<4x1xf32>
    %76 = vector.shape_cast %75 : vector<4x1xf32> to vector<4x1x1xf32>
    %cst_27 = arith.constant 3.906250e-03 : f32
    %77 = vector.broadcast %cst_27 : f32 to vector<4x1x1xf32>
    %78 = arith.mulf %76, %77 : vector<4x1x1xf32>
    %79 = vector.broadcast %78 : vector<4x1x1xf32> to vector<4x8x32xf32>
    %80 = arith.subf %72, %79 : vector<4x8x32xf32>
    %81 = arith.mulf %80, %80 : vector<4x8x32xf32>
    %cst_28 = arith.constant dense<0.000000e+00> : vector<4x8xf32>
    %82 = vector.multi_reduction <add>, %81, %cst_28 [2] : vector<4x8x32xf32> to vector<4x8xf32>
    %83 = vector.shape_cast %82 : vector<4x8xf32> to vector<4x8x1xf32>
    %cst_29 = arith.constant dense<0.000000e+00> : vector<4x1xf32>
    %84 = vector.multi_reduction <add>, %83, %cst_29 [1] : vector<4x8x1xf32> to vector<4x1xf32>
    %85 = vector.shape_cast %84 : vector<4x1xf32> to vector<4x1x1xf32>
    %cst_30 = arith.constant 3.906250e-03 : f32
    %86 = vector.broadcast %cst_30 : f32 to vector<4x1x1xf32>
    %87 = arith.mulf %85, %86 : vector<4x1x1xf32>
    %c0_31 = arith.constant 0 : index
    %c0_32 = arith.constant 0 : index
    %88 = memref.load %arg4[%c0_31, %c0_32] : memref<1x2xf32, #tpu.memory_space<smem>>
    %c0_33 = arith.constant 0 : index
    %c1_34 = arith.constant 1 : index
    %89 = memref.load %arg4[%c0_33, %c1_34] : memref<1x2xf32, #tpu.memory_space<smem>>
    %cst_35 = arith.constant 1.000000e-03 : f32
    %90 = vector.broadcast %cst_35 : f32 to vector<4x1x1xf32>
    %91 = arith.addf %87, %90 : vector<4x1x1xf32>
    %92 = math.rsqrt %91 : vector<4x1x1xf32>
    %93 = vector.broadcast %92 : vector<4x1x1xf32> to vector<4x8x32xf32>
    %94 = arith.mulf %80, %93 : vector<4x8x32xf32>
    %95 = vector.broadcast %88 : f32 to vector<4x8x32xf32>
    %96 = arith.mulf %94, %95 : vector<4x8x32xf32>
    %97 = vector.broadcast %89 : f32 to vector<4x8x32xf32>
    %98 = arith.addf %96, %97 : vector<4x8x32xf32>
    %c0_36 = arith.constant 0 : index
    %c0_37 = arith.constant 0 : index
    %c0_38 = arith.constant 0 : index
    %99 = vector.load %arg5[%c0_36, %c0_37, %c0_38] : memref<4x8x32xf32, #tpu.memory_space<vmem>>, vector<4x8x32xf32>
    tpu.vector_store %arg5[%c0_36, %c0_37, %c0_38], %98 {strides = array<i32>} : memref<4x8x32xf32, #tpu.memory_space<vmem>>, vector<4x8x32xf32>,
    return
  }
  func.func @transform_0(%arg0: i32) -> (i32, i32, i32) {
    %c0_i32 = arith.constant 0 : i32
    %c0_i32_0 = arith.constant 0 : i32
    %c0_i32_1 = arith.constant 0 : i32
    return %arg0, %c0_i32, %c0_i32_0 : i32, i32, i32
  }
  func.func @transform_1(%arg0: i32) -> (i32, i32, i32) {
    %c0_i32 = arith.constant 0 : i32
    %c0_i32_0 = arith.constant 0 : i32
    %c0_i32_1 = arith.constant 0 : i32
    %c0_i32_2 = arith.constant 0 : i32
    return %c0_i32, %c0_i32_0, %c0_i32_1 : i32, i32, i32
  }
  func.func @transform_2(%arg0: i32) -> (i32, i32) {
    %c0_i32 = arith.constant 0 : i32
    %c0_i32_0 = arith.constant 0 : i32
    %c0_i32_1 = arith.constant 0 : i32
    return %c0_i32, %c0_i32_0 : i32, i32
  }
  func.func @transform_3(%arg0: i32) -> (i32, i32) {
    %c0_i32 = arith.constant 0 : i32
    %c0_i32_0 = arith.constant 0 : i32
    %c0_i32_1 = arith.constant 0 : i32
    return %c0_i32, %c0_i32_0 : i32, i32
  }
  func.func @transform_4(%arg0: i32) -> (i32, i32, i32) {
    %c0_i32 = arith.constant 0 : i32
    %c0_i32_0 = arith.constant 0 : i32
    %c0_i32_1 = arith.constant 0 : i32
    return %arg0, %c0_i32, %c0_i32_0 : i32, i32, i32
  }
}

</mosaic_0001>

<bundles_post_ra>
// kernel: postpool_forward.1
= control target key start
LH: loop header
LB: loop body
LE: loop exit
PB: predicated region body
PF: predicated region fallthrough
CT: control target
= control target key end

     0   :  { %9 = vsyncpa [#allocation3], 0  ;;  %s1076_s0 = inlined_call_operand.hbm [shape: f32[4,8,33], index: 0, kind: input, shape index: {}]   ;;  %s1077_s1 = inlined_call_operand.hbm [shape: f32[3,33,33], index: 1, kind: input, shape index: {}]   ;;  %s1078_s2 = inlined_call_operand.hbm [shape: f32[5,33], index: 2, kind: input, shape index: {}]   ;;  %s1079_s3 = inlined_call_operand.vmem [shape: f32[1,2], index: 3, kind: input, shape index: {}]   ;;  %s1080_s4 = inlined_call_operand.vmem [shape: f32[4,8,32], index: 4, kind: output, shape index: {}]  }
   0x1   :  { %10 = vsyncpa [#allocation6], 0 }
   0x2   :  { %11 = vsyncpa [#allocation4], 0  ;;  %s939_s15 = smov [#allocation5]   ;;  %s940_s17 = smov [#allocation2]  }
   0x3   :  { %s29_s16 = sshll.u32 %s939_s15, 4  ;;  %s17_s18 = sshll.u32 %s940_s17, 4  ;;  %s30_s16 = int_to_ptr.vmem [resolvable:$true] %s29_s16  ;;  %s18_s18 = int_to_ptr.vmem [resolvable:$true] %s17_s18 }
   0x4   :  { %s869_s19 = scalar_lea.vmem %s30_s16, 1920  ;;  %p874_p1 = scmp.lt.s32.totalorder %s30_s16, %s30_s16 }
   0x5   :  { %p870_p0 = scmp.ne.s32.totalorder %s30_s16, %s869_s19  ;;  %p875_p2 = scmp.lt.s32.totalorder %s869_s19, %s869_s19 }
   0x7   :  { %p876_p3 = por %p875_p2, %p874_p1 }
   0x9   :  { %p877_p4 = pnand %p876_p3, %p870_p0 }
   0xb   :  { %880 = shalt.err (!%p877_p4)
}
   0xc   :  { %s941_s20 = smov 128   ;;  %s942_s21 = smov 8  }
   0xd   :  { %35 = dma.hbm_to_vmem [thread:$0]  %s1077_s1, 1920, %s30_s16, [#allocation6], %s941_s20, %s941_s20, %s942_s21  }
   0xe   :  { %s889_s24 = scalar_lea.vmem %s18_s18, 512  ;;  %p894_p6 = scmp.lt.s32.totalorder %s18_s18, %s18_s18 }
   0xf   :  { %p890_p5 = scmp.ne.s32.totalorder %s18_s18, %s889_s24  ;;  %p895_p7 = scmp.lt.s32.totalorder %s889_s24, %s889_s24 }
  0x11   :  { %p896_p8 = por %p895_p7, %p894_p6 }
  0x13   :  { %p897_p9 = pnand %p896_p8, %p890_p5 }
  0x15   :  { %900 = shalt.err (!%p897_p9)
}
  0x16   :  { %23 = dma.hbm_to_vmem [thread:$0]  %s1076_s0, 512, %s18_s18, [#allocation3], %s941_s20, %s941_s20, %s942_s21  }
  0x17   :  { %s52_s29 = sshll.u32 %s1079_s3, 4  ;;  %s943_s30 = smov [#allocation7]   ;;  %s53_s29 = int_to_ptr.vmem [resolvable:$true] %s52_s29 }
  0x18   :  { %s42_s5 = sshll.u32 %s943_s30, 4  ;;  %s43_s5 = int_to_ptr.vmem [resolvable:$true] %s42_s5 }
  0x19   :  { %s909_s1 = scalar_lea.vmem %s43_s5, 128  ;;  %p914_p11 = scmp.lt.s32.totalorder %s43_s5, %s43_s5 }
  0x1a   :  { %p910_p10 = scmp.ne.s32.totalorder %s43_s5, %s909_s1  ;;  %p915_p12 = scmp.lt.s32.totalorder %s909_s1, %s909_s1 }
  0x1c   :  { %p916_p13 = por %p915_p12, %p914_p11 }
  0x1e   :  { %p917_p0 = pnand %p916_p13, %p910_p10 }
  0x20   :  { %920 = shalt.err (!%p917_p0)
}
  0x21   :  { %45 = dma.hbm_to_vmem [thread:$0]  %s1078_s2, 128, %s43_s5, [#allocation6]  }
  0x22   :  { %s921_s0 = scalar_lea.vmem %s53_s29, 16  ;;  %p926_p2 = scmp.lt.s32.totalorder %s53_s29, %s53_s29 }
  0x23   :  { %p922_p1 = scmp.ne.s32.totalorder %s53_s29, %s921_s0  ;;  %p927_p3 = scmp.lt.s32.totalorder %s921_s0, %s921_s0 }
  0x25   :  { %p928_p4 = por %p927_p3, %p926_p2 }
  0x27   :  { %p929_p5 = pnand %p928_p4, %p922_p1 }
  0x29   :  { %932 = shalt.err (!%p929_p5)
}
  0x2a   :  { %s944_s3 = smov [#allocation8]  }
  0x2b   :  { %55 = dma.vmem_to_smem %s53_s29, 16, %s944_s3, [#allocation4]  }
  0x2c   :  { %933 = dma.done.wait [#allocation3], 512  }
  0x2d   :  { %934 = vsyncadd [#allocation3], 4294966784 }
  0x2e   :  { %935 = dma.done.wait [#allocation6], 2048  }
  0x2f   :  { %936 = vsyncadd [#allocation6], 4294965248 }
  0x30   :  { %937 = dma.done.wait [#allocation4], 16  }
  0x31   :  { %938 = vsyncadd [#allocation4], 4294967280 }
  0x32   :  { %68 = sfence }
  0x33   :  { %v78_v0 = vld [vmem:[#allocation5 + $0x20] sm:$0x1]  ;;  %vm92_vm0 = vcmask 1040384   ;;  %v77_v1 = vld [vmem:[#allocation5 + $0x18] sm:$0xff]  ;;  %vm79_vm1 = vcmask 269312   ;;  %v76_v3 = vld [vmem:[#allocation5 + $0x10] sm:$0xff] }
  0x34   :  { %773 = vmatprep.subr.msk.mxu0 %vm92_vm0, %v78_v0  ;;  %v70_v2 = vld [vmem:[#allocation2] sm:$0xff]  ;;  %v75_v4 = vld [vmem:[#allocation5 + $0x8] sm:$0xff]  ;;  %v72_v7 = vld [vmem:[#allocation2 + $0x10] sm:$0xff]  ;;  %vm606_vm2 = vcmask 261120   ;;  %s695_s2 = sld [smem:[#allocation8]] }
  0x35   :  { %774 = vmatpush3.msk.msra.mxu0 %vm92_vm0, %v78_v0  ;;  %783 = vmatprep.mubr.msk.f32.mxu0 %vm79_vm1, %v70_v2  ;;  %v74_v5 = vld [vmem:[#allocation5] sm:$0xff]  ;;  %v71_v6 = vld [vmem:[#allocation2 + $0x8] sm:$0xff]  ;;  %v73_v8 = vld [vmem:[#allocation2 + $0x18] sm:$0xff]  ;;  %s745_s8 = sld [smem:[#allocation8 + $0x1]] }
  0x36   :  { %775 = vmatprep.subr.mxu0 %v77_v1  ;;  %v291_v9 = vld [vmem:[#allocation5 + $0x48] sm:$0x1]  ;;  %v290_v10 = vld [vmem:[#allocation5 + $0x40] sm:$0xff]  ;;  %v289_v11 = vld [vmem:[#allocation5 + $0x38] sm:$0xff] }
  0x37   :  { %776 = vmatpush3.msra.mxu0 %v77_v1  ;;  %789 = vmatprep.subr.msk.mxu1 %vm92_vm0, %v291_v9  ;;  %v288_v12 = vld [vmem:[#allocation5 + $0x30] sm:$0xff]  ;;  %v287_v13 = vld [vmem:[#allocation5 + $0x28] sm:$0xff] }
  0x38   :  { %777 = vmatprep.subr.mxu0 %v76_v3  ;;  %790 = vmatpush3.msk.msra.mxu1 %vm92_vm0, %v291_v9 }
  0x39   :  { %778 = vmatpush3.msra.mxu0 %v76_v3  ;;  %791 = vmatprep.subr.mxu1 %v290_v10 }
  0x3a   :  { %779 = vmatprep.subr.mxu0 %v75_v4  ;;  %792 = vmatpush3.msra.mxu1 %v290_v10 }
  0x3b   :  { %780 = vmatpush3.msra.mxu0 %v75_v4  ;;  %793 = vmatprep.subr.mxu1 %v289_v11 }
  0x3c   :  { %781 = vmatprep.subr.mxu0 %v74_v5  ;;  %794 = vmatpush3.msra.mxu1 %v289_v11 }
  0x3d   :  { %782 = vmatpush3.msra.mxu0 %v74_v5  ;;  %795 = vmatprep.subr.mxu1 %v288_v12 }
  0x3e   :  { %784 = vmatmul.mubr.msk.f32.vlgmr.msra.gmra.mxu0 %vm79_vm1, %v71_v6  ;;  %796 = vmatpush3.msra.mxu1 %v288_v12 }
  0x3f   :  { %786 = vmatprep.mubr.msk.f32.mxu0 %vm79_vm1, %v72_v7  ;;  %797 = vmatprep.subr.mxu1 %v287_v13 }
  0x40   :  { %798 = vmatpush3.msra.mxu1 %v287_v13 }
  0x42   :  { %787 = vmatmul.mubr.msk.f32.gmra.mxu0 %vm79_vm1, %v73_v8 }
  0xfe   :  { %v785_v14 = vpop.f32.mrf.mxu0 }
  0xff   :  { %v188_v15 = vsel %vm79_vm1, %v785_v14, 0.0 }
 0x100   :  { %v189_v16 = vrot.slane %v188_v15, 4  ;;  %v162_v17 = vpop.f32.mrf.mxu0 }
 0x101   :  { %v181_v18 = vsel %vm79_vm1, %v162_v17, 0.0 }
 0x102   :  { %v190_v19 = vadd.f32 %v189_v16, %v188_v15  ;;  %v182_v20 = vrot.slane %v181_v18, 4  ;;  %v788_v21 = vpop.f32.mrf.mxu0 }
 0x103   :  { %v202_v22 = vsel %vm79_vm1, %v788_v21, 0.0 }
 0x104   :  { %v191_v23 = vrot.slane %v190_v19, 2  ;;  %v183_v24 = vadd.f32 %v182_v20, %v181_v18  ;;  %v203_v25 = vrot.slane %v202_v22, 4  ;;  %v172_v26 = vpop.f32.mrf.mxu0 }
 0x105   :  { %v195_v27 = vsel %vm79_vm1, %v172_v26, 0.0 }
 0x106   :  { %v192_v28 = vadd.f32 %v191_v23, %v190_v19  ;;  %v184_v29 = vrot.slane %v183_v24, 2  ;;  %v204_v30 = vadd.f32 %v203_v25, %v202_v22  ;;  %v196_v31 = vrot.slane %v195_v27, 4 }
 0x108   :  { %v193_v32 = vrot.slane %v192_v28, 1  ;;  %v185_v33 = vadd.f32 %v184_v29, %v183_v24  ;;  %v205_v34 = vrot.slane %v204_v30, 2  ;;  %v197_v35 = vadd.f32 %v196_v31, %v195_v27 }
 0x109   :  { %v266_v24 = vlaneseq }
 0x10a   :  { %v194_v36 = vadd.f32 %v193_v32, %v192_v28  ;;  %v186_v37 = vrot.slane %v185_v33, 1  ;;  %v206_v38 = vadd.f32 %v205_v34, %v204_v30  ;;  %v198_v39 = vrot.slane %v197_v35, 2 }
 0x10b   :  { %v998_v30 = vshrl.u32 %v266_v24, 7 }
 0x10c   :  { %v211_v40 = vmul.f32 0.125, %v194_v36  ;;  %v187_v41 = vadd.f32 %v186_v37, %v185_v33  ;;  %v207_v42 = vrot.slane %v206_v38, 1  ;;  %v199_v43 = vadd.f32 %v198_v39, %v197_v35  ;;  %v1001_v33 = vld [vmem:[#allocation7] sm:$0x1f] }
 0x10d   :  { %v268_v32 = vsub.s32 0, %v998_v30  ;;  %v276_v34 = vsub.s32 1, %v998_v30 }
 0x10e   :  { %v215_v44 = vsub.f32 %v785_v14, %v211_v40  ;;  %v210_v45 = vmul.f32 0.125, %v187_v41  ;;  %v208_v46 = vadd.f32 %v207_v42, %v206_v38  ;;  %v200_v47 = vrot.slane %v199_v43, 1 }
 0x10f   :  { %v269_v35 = vrot.slane %v1001_v33, %v268_v32  ;;  %v277_v39 = vrot.slane %v1001_v33, %v276_v34 }
 0x110   :  { %v219_v48 = vmul.f32 %v215_v44, %v215_v44  ;;  %v214_v49 = vsub.f32 %v162_v17, %v210_v45  ;;  %v213_v50 = vmul.f32 0.125, %v208_v46  ;;  %v201_v51 = vadd.f32 %v200_v47, %v199_v43 }
 0x112   :  { %v229_v52 = vsel %vm79_vm1, %v219_v48, 0.0  ;;  %v218_v53 = vmul.f32 %v214_v49, %v214_v49  ;;  %v217_v54 = vsub.f32 %v788_v21, %v213_v50  ;;  %v212_v55 = vmul.f32 0.125, %v201_v51 }
 0x113   :  { %v230_v56 = vrot.slane %v229_v52, 4 }
 0x114   :  { %v222_v57 = vsel %vm79_vm1, %v218_v53, 0.0  ;;  %v221_v58 = vmul.f32 %v217_v54, %v217_v54  ;;  %v216_v59 = vsub.f32 %v172_v26, %v212_v55 }
 0x115   :  { %v231_v60 = vadd.f32 %v230_v56, %v229_v52  ;;  %v223_v61 = vrot.slane %v222_v57, 4 }
 0x116   :  { %v243_v62 = vsel %vm79_vm1, %v221_v58, 0.0  ;;  %v220_v63 = vmul.f32 %v216_v59, %v216_v59 }
 0x117   :  { %v232_v0 = vrot.slane %v231_v60, 2  ;;  %v224_v1 = vadd.f32 %v223_v61, %v222_v57  ;;  %v244_v2 = vrot.slane %v243_v62, 4  ;;  %v497_v61 = vld [vmem:[#allocation5 + $0x50] sm:$0xff] }
 0x118   :  { %v236_v3 = vsel %vm79_vm1, %v220_v63, 0.0 }
 0x119   :  { %v233_v4 = vadd.f32 %v232_v0, %v231_v60  ;;  %v225_v5 = vrot.slane %v224_v1, 2  ;;  %v245_v6 = vadd.f32 %v244_v2, %v243_v62  ;;  %v237_v7 = vrot.slane %v236_v3, 4  ;;  %v498_v60 = vld [vmem:[#allocation5 + $0x58] sm:$0xff] }
 0x11b   :  { %v234_v8 = vrot.slane %v233_v4, 1  ;;  %v226_v9 = vadd.f32 %v225_v5, %v224_v1  ;;  %v246_v10 = vrot.slane %v245_v6, 2  ;;  %v238_v11 = vadd.f32 %v237_v7, %v236_v3 }
 0x11d   :  { %v235_v12 = vadd.f32 %v234_v8, %v233_v4  ;;  %v227_v13 = vrot.slane %v226_v9, 1  ;;  %v247_v14 = vadd.f32 %v246_v10, %v245_v6  ;;  %v239_v15 = vrot.slane %v238_v11, 2 }
 0x11f   :  { %v251_v16 = vmul.f32 0.125, %v235_v12  ;;  %v228_v17 = vadd.f32 %v227_v13, %v226_v9  ;;  %v248_v18 = vrot.slane %v247_v14, 1  ;;  %v240_v19 = vadd.f32 %v239_v15, %v238_v11 }
 0x121   :  { %v255_v20 = vadd.f32 1e-05, %v251_v16  ;;  %v250_v21 = vmul.f32 0.125, %v228_v17  ;;  %v249_v22 = vadd.f32 %v248_v18, %v247_v14  ;;  %v241_v23 = vrot.slane %v240_v19, 1 }
 0x123   :  { %837 = vrsqrt.f32 %v255_v20  ;;  %v254_v25 = vadd.f32 1e-05, %v250_v21  ;;  %v253_v26 = vmul.f32 0.125, %v249_v22  ;;  %v242_v27 = vadd.f32 %v241_v23, %v240_v19 }
 0x125   :  { %839 = vrsqrt.f32 %v254_v25  ;;  %v257_v28 = vadd.f32 1e-05, %v253_v26  ;;  %v252_v29 = vmul.f32 0.125, %v242_v27 }
 0x127   :  { %841 = vrsqrt.f32 %v257_v28  ;;  %v256_v31 = vadd.f32 1e-05, %v252_v29 }
 0x129   :  { %843 = vrsqrt.f32 %v256_v31 }
 0x130   :  { %v838_v36 = vpop.eup %837 }
 0x131   :  { %v263_v37 = vmul.f32 %v838_v36, %v215_v44 }
 0x132   :  { %v840_v38 = vpop.eup %839 }
 0x133   :  { %v271_v40 = vmul.f32 %v269_v35, %v263_v37  ;;  %v262_v41 = vmul.f32 %v840_v38, %v214_v49  ;;  %v501_v49 = vld [vmem:[#allocation5 + $0x70] sm:$0x1] }
 0x134   :  { %v842_v42 = vpop.eup %841  ;;  %805 = vmatprep.subr.msk.mxu0 %vm92_vm0, %v501_v49  ;;  %821 = vmatprep.subr.msk.mxu1 %vm92_vm0, %v501_v49 }
 0x135   :  { %v265_v43 = vmul.f32 %v842_v42, %v217_v54  ;;  %v270_v45 = vmul.f32 %v269_v35, %v262_v41  ;;  %v279_v47 = vadd.f32 %v277_v39, %v271_v40  ;;  %806 = vmatpush3.msk.msra.mxu0 %vm92_vm0, %v501_v49  ;;  %v500_v54 = vld [vmem:[#allocation5 + $0x68] sm:$0xff] }
 0x136   :  { %v844_v46 = vpop.eup %843  ;;  %807 = vmatprep.subr.mxu0 %v500_v54 }
 0x137   :  { %v273_v48 = vmul.f32 %v269_v35, %v265_v43  ;;  %v264_v50 = vmul.f32 %v844_v46, %v216_v59  ;;  %v278_v51 = vadd.f32 %v277_v39, %v270_v45  ;;  %v283_v56 = vmax.f32 %v279_v47, 0.0  ;;  %808 = vmatpush3.msra.mxu0 %v500_v54  ;;  %v499_v59 = vld [vmem:[#allocation5 + $0x60] sm:$0xff] }
 0x138   :  { %809 = vmatprep.subr.mxu0 %v499_v59 }
 0x139   :  { %v272_v52 = vmul.f32 %v269_v35, %v264_v50  ;;  %v282_v53 = vmax.f32 %v278_v51, 0.0  ;;  %v281_v55 = vadd.f32 %v277_v39, %v273_v48  ;;  %810 = vmatpush3.msra.mxu0 %v499_v59 }
 0x13a   :  { %811 = vmatprep.subr.mxu0 %v498_v60 }
 0x13b   :  { %v280_v57 = vadd.f32 %v277_v39, %v272_v52  ;;  %799 = vmatprep.mubr.msk.f32.mxu1 %vm79_vm1, %v282_v53  ;;  %v285_v58 = vmax.f32 %v281_v55, 0.0  ;;  %812 = vmatpush3.msra.mxu0 %v498_v60 }
 0x13c   :  { %800 = vmatmul.mubr.msk.f32.vlgmr.msra.gmra.mxu1 %vm79_vm1, %v283_v56  ;;  %813 = vmatprep.subr.mxu0 %v497_v61 }
 0x13d   :  { %v284_v44 = vmax.f32 %v280_v57, 0.0  ;;  %826 = vmatpush3.msk.msra.mxu1 %vm92_vm0, %v501_v49  ;;  %814 = vmatpush3.msra.mxu0 %v497_v61 }
 0x13e   :  { %822 = vmatprep.subr.mxu1 %v500_v54 }
 0x13f   :  { %802 = vmatprep.mubr.msk.f32.mxu1 %vm79_vm1, %v284_v44  ;;  %827 = vmatpush3.msra.mxu1 %v500_v54 }
 0x140   :  { %803 = vmatmul.mubr.msk.f32.gmra.mxu1 %vm79_vm1, %v285_v58  ;;  %823 = vmatprep.subr.mxu1 %v499_v59 }
 0x141   :  { %828 = vmatpush3.msra.mxu1 %v499_v59 }
 0x142   :  { %824 = vmatprep.subr.mxu1 %v498_v60 }
 0x143   :  { %829 = vmatpush3.msra.mxu1 %v498_v60 }
 0x144   :  { %825 = vmatprep.subr.mxu1 %v497_v61 }
 0x145   :  { %830 = vmatpush3.msra.mxu1 %v497_v61 }
 0x1fc   :  { %v801_v62 = vpop.f32.mrf.mxu1 }
 0x1fd   :  { %v399_v63 = vsel %vm79_vm1, %v801_v62, 0.0 }
 0x1fe   :  { %v400_v0 = vrot.slane %v399_v63, 4  ;;  %v373_v1 = vpop.f32.mrf.mxu1 }
 0x1ff   :  { %v392_v2 = vsel %vm79_vm1, %v373_v1, 0.0 }
 0x200   :  { %v401_v3 = vadd.f32 %v400_v0, %v399_v63  ;;  %v393_v4 = vrot.slane %v392_v2, 4  ;;  %v804_v5 = vpop.f32.mrf.mxu1 }
 0x201   :  { %v413_v6 = vsel %vm79_vm1, %v804_v5, 0.0 }
 0x202   :  { %v402_v7 = vrot.slane %v401_v3, 2  ;;  %v394_v8 = vadd.f32 %v393_v4, %v392_v2  ;;  %v414_v9 = vrot.slane %v413_v6, 4  ;;  %v383_v10 = vpop.f32.mrf.mxu1 }
 0x203   :  { %v406_v11 = vsel %vm79_vm1, %v383_v10, 0.0 }
 0x204   :  { %v403_v12 = vadd.f32 %v402_v7, %v401_v3  ;;  %v395_v13 = vrot.slane %v394_v8, 2  ;;  %v415_v14 = vadd.f32 %v414_v9, %v413_v6  ;;  %v407_v15 = vrot.slane %v406_v11, 4 }
 0x206   :  { %v404_v16 = vrot.slane %v403_v12, 1  ;;  %v396_v17 = vadd.f32 %v395_v13, %v394_v8  ;;  %v416_v18 = vrot.slane %v415_v14, 2  ;;  %v408_v19 = vadd.f32 %v407_v15, %v406_v11 }
 0x208   :  { %v405_v20 = vadd.f32 %v404_v16, %v403_v12  ;;  %v397_v21 = vrot.slane %v396_v17, 1  ;;  %v417_v22 = vadd.f32 %v416_v18, %v415_v14  ;;  %v409_v23 = vrot.slane %v408_v19, 2 }
 0x209   :  { %v478_v16 = vsub.s32 2, %v998_v30 }
 0x20a   :  { %v421_v24 = vmul.f32 0.125, %v405_v20  ;;  %v398_v25 = vadd.f32 %v397_v21, %v396_v17  ;;  %v418_v26 = vrot.slane %v417_v22, 1  ;;  %v410_v27 = vadd.f32 %v409_v23, %v408_v19 }
 0x20b   :  { %v486_v17 = vsub.s32 3, %v998_v30  ;;  %v479_v18 = vrot.slane %v1001_v33, %v478_v16 }
 0x20c   :  { %v425_v28 = vsub.f32 %v801_v62, %v421_v24  ;;  %v420_v29 = vmul.f32 0.125, %v398_v25  ;;  %v419_v31 = vadd.f32 %v418_v26, %v417_v22  ;;  %v411_v32 = vrot.slane %v410_v27, 1 }
 0x20d   :  { %v487_v22 = vrot.slane %v1001_v33, %v486_v17 }
 0x20e   :  { %v429_v34 = vmul.f32 %v425_v28, %v425_v28  ;;  %v424_v35 = vsub.f32 %v373_v1, %v420_v29  ;;  %v423_v36 = vmul.f32 0.125, %v419_v31  ;;  %v412_v37 = vadd.f32 %v411_v32, %v410_v27 }
 0x210   :  { %v439_v38 = vsel %vm79_vm1, %v429_v34, 0.0  ;;  %v428_v39 = vmul.f32 %v424_v35, %v424_v35  ;;  %v427_v40 = vsub.f32 %v804_v5, %v423_v36  ;;  %v422_v41 = vmul.f32 0.125, %v412_v37 }
 0x211   :  { %v440_v42 = vrot.slane %v439_v38, 4 }
 0x212   :  { %v432_v43 = vsel %vm79_vm1, %v428_v39, 0.0  ;;  %v431_v45 = vmul.f32 %v427_v40, %v427_v40  ;;  %v426_v46 = vsub.f32 %v383_v10, %v422_v41 }
 0x213   :  { %v441_v47 = vadd.f32 %v440_v42, %v439_v38  ;;  %v433_v48 = vrot.slane %v432_v43, 4 }
 0x214   :  { %v453_v50 = vsel %vm79_vm1, %v431_v45, 0.0  ;;  %v430_v51 = vmul.f32 %v426_v46, %v426_v46 }
 0x215   :  { %v442_v52 = vrot.slane %v441_v47, 2  ;;  %v434_v53 = vadd.f32 %v433_v48, %v432_v43  ;;  %v454_v55 = vrot.slane %v453_v50, 4 }
 0x216   :  { %v446_v56 = vsel %vm79_vm1, %v430_v51, 0.0 }
 0x217   :  { %v443_v57 = vadd.f32 %v442_v52, %v441_v47  ;;  %v435_v44 = vrot.slane %v434_v53, 2  ;;  %v455_v58 = vadd.f32 %v454_v55, %v453_v50  ;;  %v447_v49 = vrot.slane %v446_v56, 4 }
 0x219   :  { %v444_v54 = vrot.slane %v443_v57, 1  ;;  %v436_v59 = vadd.f32 %v435_v44, %v434_v53  ;;  %v456_v60 = vrot.slane %v455_v58, 2  ;;  %v448_v61 = vadd.f32 %v447_v49, %v446_v56 }
 0x21b   :  { %v445_v62 = vadd.f32 %v444_v54, %v443_v57  ;;  %v437_v63 = vrot.slane %v436_v59, 1  ;;  %v457_v0 = vadd.f32 %v456_v60, %v455_v58  ;;  %v449_v1 = vrot.slane %v448_v61, 2 }
 0x21d   :  { %v461_v2 = vmul.f32 0.125, %v445_v62  ;;  %v438_v3 = vadd.f32 %v437_v63, %v436_v59  ;;  %v458_v4 = vrot.slane %v457_v0, 1  ;;  %v450_v5 = vadd.f32 %v449_v1, %v448_v61 }
 0x21f   :  { %v465_v6 = vadd.f32 1e-05, %v461_v2  ;;  %v460_v7 = vmul.f32 0.125, %v438_v3  ;;  %v459_v8 = vadd.f32 %v458_v4, %v457_v0  ;;  %v451_v9 = vrot.slane %v450_v5, 1 }
 0x221   :  { %845 = vrsqrt.f32 %v465_v6  ;;  %v464_v10 = vadd.f32 1e-05, %v460_v7  ;;  %v463_v11 = vmul.f32 0.125, %v459_v8  ;;  %v452_v12 = vadd.f32 %v451_v9, %v450_v5 }
 0x223   :  { %847 = vrsqrt.f32 %v464_v10  ;;  %v467_v13 = vadd.f32 1e-05, %v463_v11  ;;  %v462_v14 = vmul.f32 0.125, %v452_v12 }
 0x225   :  { %849 = vrsqrt.f32 %v467_v13  ;;  %v466_v15 = vadd.f32 1e-05, %v462_v14 }
 0x227   :  { %851 = vrsqrt.f32 %v466_v15 }
 0x22e   :  { %v846_v19 = vpop.eup %845 }
 0x22f   :  { %v473_v20 = vmul.f32 %v846_v19, %v425_v28 }
 0x230   :  { %v848_v21 = vpop.eup %847 }
 0x231   :  { %v481_v23 = vmul.f32 %v479_v18, %v473_v20  ;;  %v472_v24 = vmul.f32 %v848_v21, %v424_v35  ;;  %v504_v35 = vsub.s32 4, %v998_v30 }
 0x232   :  { %v850_v25 = vpop.eup %849 }
 0x233   :  { %v480_v26 = vmul.f32 %v479_v18, %v472_v24  ;;  %v475_v27 = vmul.f32 %v850_v25, %v427_v40  ;;  %v489_v31 = vadd.f32 %v487_v22, %v481_v23  ;;  %v505_v45 = vrot.slane %v1001_v33, %v504_v35 }
 0x234   :  { %v852_v29 = vpop.eup %851 }
 0x235   :  { %v488_v32 = vadd.f32 %v487_v22, %v480_v26  ;;  %v483_v34 = vmul.f32 %v479_v18, %v475_v27  ;;  %v474_v36 = vmul.f32 %v852_v29, %v426_v46  ;;  %v493_v39 = vmax.f32 %v489_v31, 0.0 }
 0x237   :  { %v482_v37 = vmul.f32 %v479_v18, %v474_v36  ;;  %v492_v38 = vmax.f32 %v488_v32, 0.0  ;;  %v491_v41 = vadd.f32 %v487_v22, %v483_v34 }
 0x239   :  { %v490_v42 = vadd.f32 %v487_v22, %v482_v37  ;;  %815 = vmatprep.mubr.msk.f32.mxu0 %vm79_vm1, %v492_v38  ;;  %v495_v43 = vmax.f32 %v491_v41, 0.0 }
 0x23a   :  { %816 = vmatmul.mubr.msk.f32.vlgmr.msra.gmra.mxu0 %vm79_vm1, %v493_v39 }
 0x23b   :  { %v494_v28 = vmax.f32 %v490_v42, 0.0 }
 0x23d   :  { %818 = vmatprep.mubr.msk.f32.mxu1 %vm79_vm1, %v494_v28 }
 0x23e   :  { %819 = vmatmul.mubr.msk.f32.vlgmr.msra.gmra.mxu1 %vm79_vm1, %v495_v43 }
 0x2fa   :  { %v817_v40 = vpop.f32.mrf.mxu0 }
 0x2fb   :  { %v593_v50 = vadd.f32 %v817_v40, %v505_v45 }
 0x2fc   :  { %v587_v46 = vpop.f32.mrf.mxu0 }
 0x2fd   :  { %v588_v47 = vadd.f32 %v587_v46, %v505_v45  ;;  %v610_v56 = vsel %vm606_vm2, %v593_v50, 0.0 }
 0x2fe   :  { %v820_v48 = vpop.f32.mrf.mxu1 }
 0x2ff   :  { %v607_v51 = vsel %vm606_vm2, %v588_v47, 0.0  ;;  %v603_v55 = vadd.f32 %v820_v48, %v505_v45 }
 0x300   :  { %608 = vadd.xlane.f32.xlu0 %v607_v51  ;;  %v597_v52 = vpop.f32.mrf.mxu1 }
 0x301   :  { %v598_v53 = vadd.f32 %v597_v52, %v505_v45  ;;  %v616_v30 = vsel %vm606_vm2, %v603_v55, 0.0 }
 0x303   :  { %v613_v57 = vsel %vm606_vm2, %v598_v53, 0.0 }
 0x304   :  { %611 = vadd.xlane.f32.xlu0 %v610_v56  ;;  %614 = vadd.xlane.f32.xlu1 %v613_v57 }
 0x308   :  { %617 = vadd.xlane.f32.xlu1 %v616_v30 }
 0x389   :  { %v609_v33 = vpop.xlane.xlu0 %608 }
 0x38a   :  { %v619_v44 = vrot.slane %v609_v33, 4 }
 0x38c   :  { %v620_v58 = vadd.f32 %v619_v44, %v609_v33 }
 0x38d   :  { %v612_v49 = vpop.xlane.xlu0 %611  ;;  %v615_v54 = vpop.xlane.xlu1 %614 }
 0x38e   :  { %v621_v59 = vrot.slane %v620_v58, 2  ;;  %v625_v60 = vrot.slane %v612_v49, 4  ;;  %v631_v61 = vrot.slane %v615_v54, 4 }
 0x390   :  { %v622_v62 = vadd.f32 %v621_v59, %v620_v58  ;;  %v626_v63 = vadd.f32 %v625_v60, %v612_v49  ;;  %v632_v0 = vadd.f32 %v631_v61, %v615_v54 }
 0x391   :  { %v618_v1 = vpop.xlane.xlu1 %617 }
 0x392   :  { %v623_v2 = vrot.slane %v622_v62, 1  ;;  %v627_v3 = vrot.slane %v626_v63, 2  ;;  %v633_v4 = vrot.slane %v632_v0, 2  ;;  %v637_v5 = vrot.slane %v618_v1, 4 }
 0x394   :  { %v624_v6 = vadd.f32 %v623_v2, %v622_v62  ;;  %v628_v7 = vadd.f32 %v627_v3, %v626_v63  ;;  %v634_v8 = vadd.f32 %v633_v4, %v632_v0  ;;  %v638_v9 = vadd.f32 %v637_v5, %v618_v1 }
 0x396   :  { %v643_v10 = vmul.f32 0.00390625, %v624_v6  ;;  %v629_v11 = vrot.slane %v628_v7, 1  ;;  %v635_v12 = vrot.slane %v634_v8, 1  ;;  %v639_v13 = vrot.slane %v638_v9, 2 }
 0x398   :  { %v630_v14 = vadd.f32 %v629_v11, %v628_v7  ;;  %v636_v15 = vadd.f32 %v635_v12, %v634_v8  ;;  %v640_v16 = vadd.f32 %v639_v13, %v638_v9  ;;  %v1036_v17 = vsub.f32 %v588_v47, %v643_v10 }
 0x399   :  { %v709_v7 = vstv %s695_s2  ;;  %v714_v9 = vstv %s745_s8 }
 0x39a   :  { %v644_v18 = vmul.f32 0.00390625, %v630_v14  ;;  %v645_v19 = vmul.f32 0.00390625, %v636_v15  ;;  %v641_v20 = vrot.slane %v640_v16, 1  ;;  %v651_v21 = vmul.f32 %v1036_v17, %v1036_v17 }
 0x39c   :  { %v642_v22 = vadd.f32 %v641_v20, %v640_v16  ;;  %v655_v23 = vsel %vm606_vm2, %v651_v21, 0.0  ;;  %v1041_v24 = vsub.f32 %v593_v50, %v644_v18  ;;  %v1043_v25 = vsub.f32 %v598_v53, %v645_v19 }
 0x39d   :  { %656 = vadd.xlane.f32.xlu0 %v655_v23 }
 0x39e   :  { %v646_v26 = vmul.f32 0.00390625, %v642_v22  ;;  %v652_v27 = vmul.f32 %v1041_v24, %v1041_v24  ;;  %v653_v29 = vmul.f32 %v1043_v25, %v1043_v25 }
 0x3a0   :  { %v658_v31 = vsel %vm606_vm2, %v652_v27, 0.0  ;;  %v661_v32 = vsel %vm606_vm2, %v653_v29, 0.0  ;;  %v1051_v34 = vsub.f32 %v603_v55, %v646_v26 }
 0x3a1   :  { %659 = vadd.xlane.f32.xlu1 %v658_v31  ;;  %662 = vadd.xlane.f32.xlu0 %v661_v32 }
 0x3a2   :  { %v654_v36 = vmul.f32 %v1051_v34, %v1051_v34 }
 0x3a4   :  { %v664_v37 = vsel %vm606_vm2, %v654_v36, 0.0 }
 0x3a5   :  { %665 = vadd.xlane.f32.xlu1 %v664_v37 }
 0x426   :  { %v657_v38 = vpop.xlane.xlu0 %656 }
 0x427   :  { %v667_v39 = vrot.slane %v657_v38, 4 }
 0x429   :  { %v668_v41 = vadd.f32 %v667_v39, %v657_v38 }
 0x42a   :  { %v663_v42 = vpop.xlane.xlu0 %662  ;;  %v660_v28 = vpop.xlane.xlu1 %659 }
 0x42b   :  { %v669_v43 = vrot.slane %v668_v41, 2  ;;  %v679_v35 = vrot.slane %v663_v42, 4  ;;  %v673_v40 = vrot.slane %v660_v28, 4 }
 0x42d   :  { %v670_v45 = vadd.f32 %v669_v43, %v668_v41  ;;  %v680_v46 = vadd.f32 %v679_v35, %v663_v42  ;;  %v674_v47 = vadd.f32 %v673_v40, %v660_v28 }
 0x42e   :  { %v666_v48 = vpop.xlane.xlu1 %665 }
 0x42f   :  { %v671_v50 = vrot.slane %v670_v45, 1  ;;  %v681_v51 = vrot.slane %v680_v46, 2  ;;  %v675_v52 = vrot.slane %v674_v47, 2  ;;  %v685_v53 = vrot.slane %v666_v48, 4 }
 0x431   :  { %v672_v55 = vadd.f32 %v671_v50, %v670_v45  ;;  %v682_v56 = vadd.f32 %v681_v51, %v680_v46  ;;  %v676_v57 = vadd.f32 %v675_v52, %v674_v47  ;;  %v686_v30 = vadd.f32 %v685_v53, %v666_v48 }
 0x433   :  { %v691_v33 = vmul.f32 0.00390625, %v672_v55  ;;  %v683_v44 = vrot.slane %v682_v56, 1  ;;  %v677_v58 = vrot.slane %v676_v57, 1  ;;  %v687_v49 = vrot.slane %v686_v30, 2 }
 0x435   :  { %v697_v54 = vadd.f32 0.001, %v691_v33  ;;  %v684_v59 = vadd.f32 %v683_v44, %v682_v56  ;;  %v678_v60 = vadd.f32 %v677_v58, %v676_v57  ;;  %v688_v61 = vadd.f32 %v687_v49, %v686_v30 }
 0x437   :  { %853 = vrsqrt.f32 %v697_v54  ;;  %v693_v62 = vmul.f32 0.00390625, %v684_v59  ;;  %v692_v63 = vmul.f32 0.00390625, %v678_v60  ;;  %v689_v0 = vrot.slane %v688_v61, 1 }
 0x439   :  { %v699_v1 = vadd.f32 0.001, %v693_v62  ;;  %v698_v2 = vadd.f32 0.001, %v692_v63  ;;  %v690_v3 = vadd.f32 %v689_v0, %v688_v61 }
 0x43b   :  { %855 = vrsqrt.f32 %v699_v1  ;;  %v694_v4 = vmul.f32 0.00390625, %v690_v3 }
 0x43c   :  { %857 = vrsqrt.f32 %v698_v2 }
 0x43d   :  { %v700_v5 = vadd.f32 0.001, %v694_v4 }
 0x43f   :  { %859 = vrsqrt.f32 %v700_v5 }
 0x444   :  { %v854_v6 = vpop.eup %853 }
 0x445   :  { %v705_v8 = vmul.f32 %v854_v6, %v1036_v17 }
 0x447   :  { %v710_v10 = vmul.f32 %v709_v7, %v705_v8 }
 0x448   :  { %v856_v11 = vpop.eup %855 }
 0x449   :  { %v858_v12 = vpop.eup %857  ;;  %v715_v13 = vadd.f32 %v714_v9, %v710_v10  ;;  %v707_v14 = vmul.f32 %v856_v11, %v1043_v25 }
 0x44a   :  { %v706_v15 = vmul.f32 %v858_v12, %v1041_v24 }
 0x44b   :  { %719 = vst.msk [vmem:[%s1080_s4] sm:$0xff] %vm606_vm2, %v715_v13  ;;  %v712_v16 = vmul.f32 %v709_v7, %v707_v14 }
 0x44c   :  { %v860_v18 = vpop.eup %859  ;;  %v711_v19 = vmul.f32 %v709_v7, %v706_v15 }
 0x44d   :  { %v717_v20 = vadd.f32 %v714_v9, %v712_v16  ;;  %v708_v17 = vmul.f32 %v860_v18, %v1051_v34 }
 0x44e   :  { %v716_v21 = vadd.f32 %v714_v9, %v711_v19 }
 0x44f   :  { %721 = vst.msk [vmem:[%s1080_s4 + $0x10] sm:$0xff] %vm606_vm2, %v717_v20  ;;  %v713_v22 = vmul.f32 %v709_v7, %v708_v17 }
 0x450   :  { %720 = vst.msk [vmem:[%s1080_s4 + $0x8] sm:$0xff] %vm606_vm2, %v716_v21 }
 0x451   :  { %v718_v23 = vadd.f32 %v714_v9, %v713_v22 }
 0x453   :  { %722 = vst.msk [vmem:[%s1080_s4 + $0x18] sm:$0xff] %vm606_vm2, %v718_v23 }
 0x454   :  { %727 = vsyncpa [#allocation3], 1 }
 0x455   :  { %728 = vsyncpa [#allocation6], 1 }
 0x456   :  { %729 = vsyncpa [#allocation4], 1 }

</bundles_post_ra>
